<compile_context>
chip_gen: v7x
topology: tpu7x:2x2x1
jax: 0.10.0
libtpu: 0.0.40
codegen_flags: <defaults>
</compile_context>

<pallas_src>
import functools
import math

import jax
import jax.numpy as jnp
import numpy as np
from jax.experimental import pallas as pl
from jax.experimental.pallas import tpu as pltpu

_LANES = 128
_SUBLANES = 8
_MAX_TILE_ROWS = 2048
_LOG2 = math.log(2.0)
_LOGCOSH_PALLAS_MIN_ELEMS = 4096  # below this a kernel launch is pure overhead


# ----------------------------------------------------------------------------
# VMEM / tile sizing (generation-aware)
# ----------------------------------------------------------------------------
def _vmem_capacity_bytes():
    try:
        return int(pltpu.get_tpu_info().vmem_capacity_bytes)
    except Exception:
        return 64 << 20  # conservative fallback: v7x per-TensorCore VMEM


def _working_set_budget_bytes():
    # Target bytes for (2 inputs x 2 pipeline buffers + f32 accumulator).
    cap = _vmem_capacity_bytes()
    return (24 << 20) if cap >= (96 << 20) else (12 << 20)


def _pick_tile_rows(n_rows, n_cols, in_itemsize):
    # Per tile row: 2 inputs x 2 pipeline buffers x itemsize + 4 B f32 acc.
    bytes_per_row = max(1, n_cols * (4 * in_itemsize + 4))
    cap_rows = max(_SUBLANES, _working_set_budget_bytes() // bytes_per_row)
    cap_rows = max(_SUBLANES, min(_MAX_TILE_ROWS, (cap_rows // _SUBLANES) * _SUBLANES))
    if n_rows <= cap_rows:
        return int(n_rows)  # single full-extent tile (no ragged masking needed)
    return int(cap_rows)


def _vmem_limit_bytes(tile_rows, n_cols, in_itemsize):
    footprint = tile_rows * n_cols * (4 * in_itemsize + 4)
    return int(min(48 << 20, max(16 << 20, footprint + (8 << 20))))


# ----------------------------------------------------------------------------
# Pallas kernels
# ----------------------------------------------------------------------------
def _wmse_kernel(n_rows, inv_n, lam_ref, pred_ref, targ_ref, out_ref, acc_ref):
    """Weighted MSE: sum(d2 * where(t!=0, 1, lam)) / N.
    grid = (core_split 'parallel', row_tiles 'arbitrary').  Ragged / clamped
    tiles are masked in-kernel via the UNclamped global row index."""
    c = pl.program_id(0)
    j = pl.program_id(1)
    n_j = pl.num_programs(1)

    @pl.when(j == 0)
    def _():
        acc_ref[...] = jnp.zeros_like(acc_ref)

    tile_rows, n_cols = acc_ref.shape
    row0 = (c * n_j + j) * tile_rows  # unclamped global row of this tile
    rows = row0 + jax.lax.broadcasted_iota(jnp.int32, (tile_rows, n_cols), 0)
    valid = rows < n_rows

    p = pred_ref[...].astype(jnp.float32)
    t = targ_ref[...].astype(jnp.float32)
    d2 = (p - t) * (p - t)
    w = jnp.where(t != 0, jnp.float32(1.0), lam_ref[0])
    acc_ref[...] = acc_ref[...] + jnp.where(valid, d2 * w, jnp.float32(0.0))

    @pl.when(j == n_j - 1)
    def _():
        total = jnp.sum(acc_ref[...]) * jnp.float32(inv_n)
        out_ref[...] = jnp.full(out_ref.shape, total, dtype=jnp.float32)


def _logcosh_kernel(n_valid, inv_n, pred_ref, targ_ref, out_ref, acc_ref):
    """sum(log(cosh(p - t))) / N with the overflow-safe identity
    log(cosh(d)) = |d| + log1p(exp(-2|d|)) - log(2)."""
    c = pl.program_id(0)
    j = pl.program_id(1)
    n_j = pl.num_programs(1)

    @pl.when(j == 0)
    def _():
        acc_ref[...] = jnp.zeros_like(acc_ref)

    tile_rows, n_cols = acc_ref.shape
    elem0 = (c * n_j + j) * tile_rows * n_cols  # unclamped global element idx
    idx = elem0 + (
        jax.lax.broadcasted_iota(jnp.int32, (tile_rows, n_cols), 0) * n_cols
        + jax.lax.broadcasted_iota(jnp.int32, (tile_rows, n_cols), 1)
    )
    valid = idx < n_valid

    d = pred_ref[...].astype(jnp.float32) - targ_ref[...].astype(jnp.float32)
    d = jnp.where(valid, d, jnp.float32(0.0))  # masked -> logcosh(0) == 0 exactly
    ad = jnp.abs(d)
    acc_ref[...] = acc_ref[...] + (
        ad + jnp.log1p(jnp.exp(-2.0 * ad)) - jnp.float32(_LOG2)
    )

    @pl.when(j == n_j - 1)
    def _():
        total = jnp.sum(acc_ref[...]) * jnp.float32(inv_n)
        out_ref[...] = jnp.full(out_ref.shape, total, dtype=jnp.float32)


# ----------------------------------------------------------------------------
# Wrappers
# ----------------------------------------------------------------------------
def weighted_mse_loss_pallas(predictions, targets, lambda_value):
    """(sum_nonzero d2 + lam * sum_zero d2) / numel for one edge type."""
    p2 = predictions if predictions.ndim == 2 else predictions.reshape(-1, predictions.shape[-1])
    t2 = targets if targets.ndim == 2 else targets.reshape(-1, targets.shape[-1])
    if p2.shape != t2.shape:
        raise ValueError(f"shape mismatch: {p2.shape} vs {t2.shape}")
    R, C = t2.shape
    itemsize = max(np.dtype(p2.dtype).itemsize, np.dtype(t2.dtype).itemsize)
    tile_rows = _pick_tile_rows(R, C, itemsize)
    n_tiles = -(-R // tile_rows)
    n_core = 2 if n_tiles >= 2 else 1  # leading "parallel" axis -> both TCs on v7x
    tiles_per_core = -(-n_tiles // n_core)
    inv_n = 1.0 / float(R * C)

    def in_map(c, j, lam_ref):
        # Clamp so the DMA stays in bounds; over-run tiles are masked in-kernel.
        return (jnp.minimum(c * tiles_per_core + j, n_tiles - 1), 0)

    kernel = functools.partial(_wmse_kernel, R, inv_n)
    partials = pl.pallas_call(
        kernel,
        out_shape=jax.ShapeDtypeStruct((n_core, _SUBLANES, _LANES), jnp.float32),
        grid_spec=pltpu.PrefetchScalarGridSpec(
            num_scalar_prefetch=1,  # lambda -> SMEM (no recompile per lambda)
            grid=(n_core, tiles_per_core),
            in_specs=[
                pl.BlockSpec((tile_rows, C), in_map),
                pl.BlockSpec((tile_rows, C), in_map),
            ],
            out_specs=pl.BlockSpec((1, _SUBLANES, _LANES), lambda c, j, lam_ref: (c, 0, 0)),
            scratch_shapes=[pltpu.VMEM((tile_rows, C), jnp.float32)],
        ),
        compiler_params=pltpu.CompilerParams(
            dimension_semantics=("parallel", "arbitrary"),
            vmem_limit_bytes=_vmem_limit_bytes(tile_rows, C, itemsize),
        ),
    )(jnp.asarray([lambda_value], dtype=jnp.float32), p2, t2)
    return jnp.sum(partials[:, 0, 0])


def logcosh_loss_pallas(predictions, targets):
    """mean(log(cosh(pred - targ))) over all elements (stable form)."""
    p = jnp.ravel(predictions)
    t = jnp.ravel(targets)
    n = int(p.shape[0])
    if n == 0:
        return jnp.float32(0.0)
    if n < _LOGCOSH_PALLAS_MIN_ELEMS:
        # Tiny tensors: the Pallas launch/DMA fixed cost dominates -> fused jnp.
        d = jnp.abs(p.astype(jnp.float32) - t.astype(jnp.float32))
        return jnp.mean(d + jnp.log1p(jnp.exp(-2.0 * d)) - jnp.float32(_LOG2))

    rows = -(-n // _LANES)
    n_flat = rows * _LANES
    if n_flat != n:
        # Tail-only pad (<128 elems) so the free lane-dense (rows,128) reshape
        # is possible; the tail is also masked in-kernel (idx < n).
        p = jnp.pad(p, (0, n_flat - n))
        t = jnp.pad(t, (0, n_flat - n))
    p2 = p.reshape(rows, _LANES)
    t2 = t.reshape(rows, _LANES)

    itemsize = max(np.dtype(p2.dtype).itemsize, np.dtype(t2.dtype).itemsize)
    tile_rows = _pick_tile_rows(rows, _LANES, itemsize)
    n_tiles = -(-rows // tile_rows)
    n_core = 2 if n_tiles >= 2 else 1
    tiles_per_core = -(-n_tiles // n_core)
    inv_n = 1.0 / float(n)

    def in_map(c, j):
        return (jnp.minimum(c * tiles_per_core + j, n_tiles - 1), 0)

    kernel = functools.partial(_logcosh_kernel, n, inv_n)
    partials = pl.pallas_call(
        kernel,
        out_shape=jax.ShapeDtypeStruct((n_core, _SUBLANES, _LANES), jnp.float32),
        grid_spec=pltpu.PrefetchScalarGridSpec(
            num_scalar_prefetch=0,
            grid=(n_core, tiles_per_core),
            in_specs=[
                pl.BlockSpec((tile_rows, _LANES), in_map),
                pl.BlockSpec((tile_rows, _LANES), in_map),
            ],
            out_specs=pl.BlockSpec((1, _SUBLANES, _LANES), lambda c, j: (c, 0, 0)),
            scratch_shapes=[pltpu.VMEM((tile_rows, _LANES), jnp.float32)],
        ),
        compiler_params=pltpu.CompilerParams(
            dimension_semantics=("parallel", "arbitrary"),
            vmem_limit_bytes=_vmem_limit_bytes(tile_rows, _LANES, itemsize),
        ),
    )(p2, t2)
    return jnp.sum(partials[:, 0, 0])


# ----------------------------------------------------------------------------
# DangoLoss (JAX / Pallas version)
# ----------------------------------------------------------------------------
class PreThenPost:
    def __init__(self, transition_epoch=10):
        self.transition_epoch = transition_epoch

    def forward(self, recon_loss, interaction_loss, current_epoch=0):
        # NOTE: Python-level branch -> current_epoch must be a Python int
        # (same semantics as the PyTorch module); not traceable under jit.
        if current_epoch < self.transition_epoch:
            alpha = 1.0
            weighted_recon_loss = recon_loss
            weighted_interaction_loss = jnp.zeros_like(interaction_loss)
            total_loss = weighted_recon_loss
        else:
            alpha = 0.0
            weighted_recon_loss = jnp.zeros_like(recon_loss)
            weighted_interaction_loss = interaction_loss
            total_loss = weighted_interaction_loss
        return total_loss, alpha, weighted_recon_loss, weighted_interaction_loss


class DangoLossPallas:
    def __init__(self, edge_types, lambda_values, scheduler=None, reduction="mean"):
        if reduction not in ("none", "mean", "sum"):
            raise ValueError(f"Invalid reduction mode: {reduction}")
        self.edge_types = edge_types
        self.lambda_values = lambda_values
        self.scheduler = scheduler or PreThenPost(transition_epoch=10)
        self.reduction = reduction

    def compute_weighted_mse_loss(self, predictions, targets, lambda_value):
        return weighted_mse_loss_pallas(predictions, targets, float(lambda_value))

    def compute_reconstruction_loss(self, reconstructions, adjacency_matrices):
        total = jnp.float32(0.0)
        num_networks = 0
        for edge_type in self.edge_types:
            if edge_type in reconstructions and edge_type in adjacency_matrices:
                lam = float(self.lambda_values.get(edge_type, 1.0))
                total = total + weighted_mse_loss_pallas(
                    reconstructions[edge_type], adjacency_matrices[edge_type], lam
                )
                num_networks += 1
        if num_networks > 0:
            total = total / num_networks
        return total

    def compute_interaction_loss(self, predictions, targets):
        return logcosh_loss_pallas(predictions, targets)

    def __call__(self, predictions, targets, reconstructions, adjacency_matrices,
                 current_epoch=0):
        recon_loss = self.compute_reconstruction_loss(reconstructions, adjacency_matrices)
        interaction_loss = self.compute_interaction_loss(predictions, targets)
        total_loss, alpha, w_recon, w_inter = self.scheduler.forward(
            recon_loss, interaction_loss, current_epoch
        )
        loss_dict = {
            "reconstruction_loss": recon_loss,
            "interaction_loss": interaction_loss,
            "weighted_reconstruction_loss": w_recon,
            "weighted_interaction_loss": w_inter,
            "alpha": jnp.asarray(alpha, dtype=jnp.float32),
        }
        return total_loss, loss_dict


# ----------------------------------------------------------------------------
# float64 numpy references (for correctness checks)
# ----------------------------------------------------------------------------
def _ref_weighted_mse(p, t, lam):
    p = np.asarray(p, np.float64)
    t = np.asarray(t, np.float64)
    d2 = (p - t) ** 2
    return (np.sum(d2 * (t != 0)) + lam * np.sum(d2 * (t == 0))) / t.size


def _ref_logcosh(p, t):
    d = np.abs(np.asarray(p, np.float64) - np.asarray(t, np.float64))
    return np.mean(d + np.log1p(np.exp(-2.0 * d)) - math.log(2.0))


# ----------------------------------------------------------------------------
# Main
# ----------------------------------------------------------------------------
if __name__ == "__main__":
    key = jax.random.PRNGKey(0)
    k1, k2, k3, k4, k5, k6, k7, k8 = jax.random.split(key, 8)

    edge_types = ["ppi", "reg", "coexpression"]
    lambda_values = {"ppi": 0.5, "reg": 1.5, "coexpression": 2.0}

    # --- small DangoLoss demo (matches the module's typical call) ---
    R1, C1 = 20, 128
    R2, C2 = 16, 96
    B = 8

    adj_ppi = jax.random.normal(k1, (R1, C1), jnp.float32)
    adj_ppi = jnp.where(jax.random.uniform(k2, (R1, C1)) < 0.7, 0.0, adj_ppi)
    adj_reg = jax.random.normal(k3, (R1, C1), jnp.float32)
    adj_reg = jnp.where(jax.random.uniform(k4, (R1, C1)) < 0.6, 0.0, adj_reg)
    adj_coe = jax.random.normal(k5, (R2, C2), jnp.float32)
    adj_coe = jnp.where(jax.random.uniform(k6, (R2, C2)) < 0.5, 0.0, adj_coe)

    recon_ppi = adj_ppi + 0.1 * jax.random.normal(k7, (R1, C1), jnp.float32)
    recon_reg = adj_reg + 0.2 * jax.random.normal(k8, (R1, C1), jnp.float32)
    recon_coe = adj_coe + 0.1 * jax.random.normal(k2, (R2, C2), jnp.float32)

    reconstructions = {"ppi": recon_ppi, "reg": recon_reg, "coexpression": recon_coe}
    adjacency_matrices = {"ppi": adj_ppi, "reg": adj_reg, "coexpression": adj_coe}

    kp, kt = jax.random.split(k1)
    predictions = jax.random.normal(kp, (B,), jnp.float32)
    targets = jax.random.normal(kt, (B,), jnp.float32)

    loss_fn = DangoLossPallas(edge_types, lambda_values)
    total0, d0 = loss_fn(predictions, targets, reconstructions,
                         adjacency_matrices, current_epoch=0)
    total1, d1 = loss_fn(predictions, targets, reconstructions,
                         adjacency_matrices, current_epoch=20)
    jax.block_until_ready((total0, total1, d0, d1))

    ref_recon = (
        _ref_weighted_mse(recon_ppi, adj_ppi, 0.5)
        + _ref_weighted_mse(recon_reg, adj_reg, 1.5)
        + _ref_weighted_mse(recon_coe, adj_coe, 2.0)
    ) / 3.0
    ref_inter = _ref_logcosh(predictions, targets)

    np.testing.assert_allclose(np.asarray(d0["reconstruction_loss"]), ref_recon,
                               rtol=1e-5, atol=1e-6)
    np.testing.assert_allclose(np.asarray(d0["interaction_loss"]), ref_inter,
                               rtol=1e-5, atol=1e-6)
    np.testing.assert_allclose(np.asarray(total0), ref_recon, rtol=1e-5, atol=1e-6)
    np.testing.assert_allclose(np.asarray(total1), ref_inter, rtol=1e-5, atol=1e-6)

    # --- larger weighted-MSE: ragged row tiles + 2-way core split path ---
    kb1, kb2, kb3 = jax.random.split(k3, 3)
    Rb, Cb = 2100, 256
    pb = jax.random.normal(kb1, (Rb, Cb), jnp.float32)
    tb = jnp.where(jax.random.uniform(kb2, (Rb, Cb)) < 0.6, 0.0,
                   jax.random.normal(kb3, (Rb, Cb), jnp.float32))
    big_wmse = weighted_mse_loss_pallas(pb, tb, 0.7)
    jax.block_until_ready(big_wmse)
    np.testing.assert_allclose(np.asarray(big_wmse), _ref_weighted_mse(pb, tb, 0.7),
                               rtol=1e-4, atol=1e-6)

    # --- larger log-cosh (Pallas path): ragged tail + clamped tile + core split ---
    kl1, kl2 = jax.random.split(k5)
    Nbig = 600_000  # not a multiple of 128 -> exercises tail handling
    pl_big = jax.random.normal(kl1, (Nbig,), jnp.float32)
    tl_big = jax.random.normal(kl2, (Nbig,), jnp.float32)
    lc_big = logcosh_loss_pallas(pl_big, tl_big)
    jax.block_until_ready(lc_big)
    np.testing.assert_allclose(np.asarray(lc_big), _ref_logcosh(pl_big, tl_big),
                               rtol=1e-4, atol=1e-6)

    # --- bf16 inputs streamed natively (kernel upcasts after load) ---
    kb16a, kb16b = jax.random.split(k6)
    Nbf = 300_000
    p_bf = jax.random.normal(kb16a, (Nbf,), jnp.float32).astype(jnp.bfloat16)
    t_bf = jax.random.normal(kb16b, (Nbf,), jnp.float32).astype(jnp.bfloat16)
    lc_bf = logcosh_loss_pallas(p_bf, t_bf)
    jax.block_until_ready(lc_bf)
    np.testing.assert_allclose(
        np.asarray(lc_bf),
        _ref_logcosh(np.asarray(p_bf.astype(jnp.float32)),
                     np.asarray(t_bf.astype(jnp.float32))),
        rtol=1e-4, atol=1e-6)

    # --- overflow-safety check (tiny N -> fused jnp path; naive log(cosh) = inf) ---
    big_pred = jnp.array([150.0, -200.0, 3.0, 0.0], dtype=jnp.float32)
    big_targ = jnp.array([-150.0, 10.0, -1.0, 0.0], dtype=jnp.float32)
    lc_ovf = logcosh_loss_pallas(big_pred, big_targ)
    jax.block_until_ready(lc_ovf)
    assert np.isfinite(np.asarray(lc_ovf))
    np.testing.assert_allclose(np.asarray(lc_ovf), _ref_logcosh(big_pred, big_targ),
                               rtol=1e-5, atol=1e-6)

    print("KERNEL_OK")
</pallas_src>

<mosaic_0001>
module attributes {stable_mosaic.version = 11 : i64} {
  func.func @_wmse_kernel(%arg0: i32, %arg1: i32, %arg2: memref<1xf32, #tpu.memory_space<smem>>, %arg3: memref<20x128xf32, #tpu.memory_space<vmem>>, %arg4: memref<20x128xf32, #tpu.memory_space<vmem>>, %arg5: memref<1x8x128xf32, #tpu.memory_space<vmem>>, %arg6: memref<20x128xf32, #tpu.memory_space<vmem>>) attributes {dimension_semantics = [#tpu.dimension_semantics<parallel>, #tpu.dimension_semantics<arbitrary>], iteration_bounds = array<i64: 1, 1>, scalar_prefetch = 1 : i64, scratch_operands = 1 : i64, tpu.core_type = #tpu.core_type<tc>, window_params = [{transform_indices = @transform_0, window_bounds = array<i64: 20, 128>}, {transform_indices = @transform_1, window_bounds = array<i64: 20, 128>}, {transform_indices = @transform_2, window_bounds = array<i64: 1, 8, 128>}]} {
    %c0_i32 = arith.constant 0 : i32
    %0 = arith.cmpi eq, %arg1, %c0_i32 : i32
    %1 = arith.extui %0 : i1 to i32
    %c0_i32_0 = arith.constant 0 : i32
    %2 = arith.cmpi ne, %1, %c0_i32_0 : i32
    scf.if %2 {
      %cst_14 = arith.constant 0.000000e+00 : f32
      %31 = vector.broadcast %cst_14 : f32 to vector<20x128xf32>
      %c0_15 = arith.constant 0 : index
      %c0_16 = arith.constant 0 : index
      %32 = vector.load %arg6[%c0_15, %c0_16] : memref<20x128xf32, #tpu.memory_space<vmem>>, vector<20x128xf32>
      tpu.vector_store %arg6[%c0_15, %c0_16], %31 {strides = array<i32>} : memref<20x128xf32, #tpu.memory_space<vmem>>, vector<20x128xf32>,
    } else {
    }
    %c1_i32 = arith.constant 1 : i32
    %3 = arith.muli %arg0, %c1_i32 : i32
    %4 = arith.addi %3, %arg1 : i32
    %c20_i32 = arith.constant 20 : i32
    %5 = arith.muli %4, %c20_i32 : i32
    %6 = tpu.iota {dimensions = array<i32: 0>} : vector<20x128xi32>
    %7 = vector.broadcast %5 : i32 to vector<20x128xi32>
    %8 = arith.addi %7, %6 : vector<20x128xi32>
    %c20_i32_1 = arith.constant 20 : i32
    %9 = vector.broadcast %c20_i32_1 : i32 to vector<20x128xi32>
    %10 = arith.cmpi slt, %8, %9 : vector<20x128xi32>
    %c0 = arith.constant 0 : index
    %c0_2 = arith.constant 0 : index
    %11 = vector.load %arg3[%c0, %c0_2] : memref<20x128xf32, #tpu.memory_space<vmem>>, vector<20x128xf32>
    %c0_3 = arith.constant 0 : index
    %c0_4 = arith.constant 0 : index
    %12 = vector.load %arg4[%c0_3, %c0_4] : memref<20x128xf32, #tpu.memory_space<vmem>>, vector<20x128xf32>
    %13 = arith.subf %11, %12 : vector<20x128xf32>
    %14 = arith.subf %11, %12 : vector<20x128xf32>
    %15 = arith.mulf %13, %14 : vector<20x128xf32>
    %cst = arith.constant 0.000000e+00 : f32
    %16 = vector.broadcast %cst : f32 to vector<20x128xf32>
    %17 = arith.cmpf one, %12, %16 : vector<20x128xf32>
    %c0_5 = arith.constant 0 : index
    %18 = memref.load %arg2[%c0_5] : memref<1xf32, #tpu.memory_space<smem>>
    %cst_6 = arith.constant 1.000000e+00 : f32
    %19 = vector.broadcast %cst_6 : f32 to vector<20x128xf32>
    %20 = vector.broadcast %18 : f32 to vector<20x128xf32>
    %21 = arith.select %17, %19, %20 : vector<20x128xi1>, vector<20x128xf32>
    %c0_7 = arith.constant 0 : index
    %c0_8 = arith.constant 0 : index
    %22 = vector.load %arg6[%c0_7, %c0_8] : memref<20x128xf32, #tpu.memory_space<vmem>>, vector<20x128xf32>
    %23 = arith.mulf %15, %21 : vector<20x128xf32>
    %cst_9 = arith.constant 0.000000e+00 : f32
    %24 = vector.broadcast %cst_9 : f32 to vector<20x128xf32>
    %25 = arith.select %10, %23, %24 : vector<20x128xi1>, vector<20x128xf32>
    %26 = arith.addf %22, %25 : vector<20x128xf32>
    %c0_10 = arith.constant 0 : index
    %c0_11 = arith.constant 0 : index
    %27 = vector.load %arg6[%c0_10, %c0_11] : memref<20x128xf32, #tpu.memory_space<vmem>>, vector<20x128xf32>
    tpu.vector_store %arg6[%c0_10, %c0_11], %26 {strides = array<i32>} : memref<20x128xf32, #tpu.memory_space<vmem>>, vector<20x128xf32>,
    %c0_i32_12 = arith.constant 0 : i32
    %28 = arith.cmpi eq, %arg1, %c0_i32_12 : i32
    %29 = arith.extui %28 : i1 to i32
    %c0_i32_13 = arith.constant 0 : i32
    %30 = arith.cmpi ne, %29, %c0_i32_13 : i32
    scf.if %30 {
      %c0_14 = arith.constant 0 : index
      %c0_15 = arith.constant 0 : index
      %31 = vector.load %arg6[%c0_14, %c0_15] : memref<20x128xf32, #tpu.memory_space<vmem>>, vector<20x128xf32>
      %32 = vector.shape_cast %31 : vector<20x128xf32> to vector<1x20x128xf32>
      %cst_16 = arith.constant dense<0.000000e+00> : vector<1xf32>
      %33 = vector.multi_reduction <add>, %32, %cst_16 [1, 2] : vector<1x20x128xf32> to vector<1xf32>
      %34 = vector.shape_cast %33 : vector<1xf32> to vector<1x1x1xf32>
      %35 = vector.extract %34[0, 0, 0] : f32 from vector<1x1x1xf32>
      %cst_17 = arith.constant 3.906250e-04 : f32
      %36 = arith.mulf %35, %cst_17 : f32
      %37 = vector.broadcast %36 : f32 to vector<1x8x128xf32>
      %c0_18 = arith.constant 0 : index
      %c0_19 = arith.constant 0 : index
      %c0_20 = arith.constant 0 : index
      %38 = vector.load %arg5[%c0_18, %c0_19, %c0_20] : memref<1x8x128xf32, #tpu.memory_space<vmem>>, vector<1x8x128xf32>
      tpu.vector_store %arg5[%c0_18, %c0_19, %c0_20], %37 {strides = array<i32>} : memref<1x8x128xf32, #tpu.memory_space<vmem>>, vector<1x8x128xf32>,
    } else {
    }
    return
  }
  func.func @transform_0(%arg0: i32, %arg1: i32, %arg2: memref<1xf32, #tpu.memory_space<smem>>) -> (i32, i32) {
    %c1_i32 = arith.constant 1 : i32
    %0 = arith.muli %arg0, %c1_i32 : i32
    %1 = arith.addi %0, %arg1 : i32
    %c0_i32 = arith.constant 0 : i32
    %2 = arith.minsi %1, %c0_i32 : i32
    %c0_i32_0 = arith.constant 0 : i32
    %c0_i32_1 = arith.constant 0 : i32
    return %2, %c0_i32_0 : i32, i32
  }
  func.func @transform_1(%arg0: i32, %arg1: i32, %arg2: memref<1xf32, #tpu.memory_space<smem>>) -> (i32, i32) {
    %c1_i32 = arith.constant 1 : i32
    %0 = arith.muli %arg0, %c1_i32 : i32
    %1 = arith.addi %0, %arg1 : i32
    %c0_i32 = arith.constant 0 : i32
    %2 = arith.minsi %1, %c0_i32 : i32
    %c0_i32_0 = arith.constant 0 : i32
    %c0_i32_1 = arith.constant 0 : i32
    return %2, %c0_i32_0 : i32, i32
  }
  func.func @transform_2(%arg0: i32, %arg1: i32, %arg2: memref<1xf32, #tpu.memory_space<smem>>) -> (i32, i32, i32) {
    %c0_i32 = arith.constant 0 : i32
    %c0_i32_0 = arith.constant 0 : i32
    %c0_i32_1 = arith.constant 0 : i32
    return %arg0, %c0_i32, %c0_i32_0 : i32, i32, i32
  }
}

</mosaic_0001>

<bundles_post_ra>
// kernel: tpu_custom_call.1
= control target key start
LH: loop header
LB: loop body
LE: loop exit
PB: predicated region body
PF: predicated region fallthrough
CT: control target
= control target key end

     0   :  { %9 = vsyncpa [#allocation6], 0  ;;  %s304_s0 = inlined_call_operand.<no memory space> [shape: f32[1], index: 0, kind: input, shape index: {}]   ;;  %s305_s1 = inlined_call_operand.hbm [shape: f32[20,128], index: 1, kind: input, shape index: {}]   ;;  %s306_s2 = inlined_call_operand.hbm [shape: f32[20,128], index: 2, kind: input, shape index: {}]   ;;  %s307_s3 = inlined_call_operand.hbm [shape: f32[1,8,128], index: 3, kind: output, shape index: {}]  }
   0x1   :  { %10 = vsyncpa [#allocation9], 0 }
   0x2   :  { %11 = vsyncpa [#allocation7], 0  ;;  %s239_s12 = smov [#allocation5]   ;;  %s167_s16 = scalar_lea.hbm %s305_s1, 384 }
   0x3   :  { %s23_s13 = sshll.u32 %s239_s12, 4  ;;  %p168_p0 = scmp.ne.s32.totalorder %s305_s1, %s167_s16  ;;  %s24_s13 = int_to_ptr.vmem [resolvable:$true] %s23_s13 }
   0x4   :  { %p171_p1 = scmp.lt.u32.totalorder %s167_s16, %s305_s1 }
   0x6   :  { %p173_p2 = pnand %p171_p1, %p168_p0 }
   0x8   :  { %176 = shalt.err (!%p173_p2)
}
   0x9   :  { %s177_s21 = scalar_lea.vmem %s24_s13, 384  ;;  %p182_p4 = scmp.lt.s32.totalorder %s24_s13, %s24_s13 }
   0xa   :  { %p178_p3 = scmp.ne.s32.totalorder %s24_s13, %s177_s21  ;;  %p183_p5 = scmp.lt.s32.totalorder %s177_s21, %s177_s21 }
   0xc   :  { %p184_p6 = por %p183_p5, %p182_p4 }
   0xe   :  { %p185_p7 = pnand %p184_p6, %p178_p3 }
  0x10   :  { %188 = shalt.err (!%p185_p7)
}
  0x11   :  { %s240_s22 = smov 128   ;;  %s241_s23 = smov 8  }
  0x12   :  { %29 = dma.hbm_to_vmem [thread:$0]  %s305_s1, 384, %s24_s13, [#allocation6], %s240_s22, %s240_s22, %s241_s23  }
  0x13   :  { %s242_s26 = smov [#allocation8]   ;;  %s189_s30 = scalar_lea.hbm %s306_s2, 384 }
  0x14   :  { %s41_s27 = sshll.u32 %s242_s26, 4  ;;  %p190_p8 = scmp.ne.s32.totalorder %s306_s2, %s189_s30  ;;  %s42_s27 = int_to_ptr.vmem [resolvable:$true] %s41_s27 }
  0x15   :  { %p193_p9 = scmp.lt.u32.totalorder %s189_s30, %s306_s2 }
  0x17   :  { %p195_p10 = pnand %p193_p9, %p190_p8 }
  0x19   :  { %198 = shalt.err (!%p195_p10)
}
  0x1a   :  { %s199_s8 = scalar_lea.vmem %s42_s27, 384  ;;  %p204_p12 = scmp.lt.s32.totalorder %s42_s27, %s42_s27 }
  0x1b   :  { %p200_p11 = scmp.ne.s32.totalorder %s42_s27, %s199_s8  ;;  %p205_p13 = scmp.lt.s32.totalorder %s199_s8, %s199_s8 }
  0x1d   :  { %p206_p0 = por %p205_p13, %p204_p12 }
  0x1f   :  { %p207_p1 = pnand %p206_p0, %p200_p11 }
  0x21   :  { %210 = shalt.err (!%p207_p1)
}
  0x22   :  { %47 = dma.hbm_to_vmem [thread:$0]  %s306_s2, 384, %s42_s27, [#allocation9], %s240_s22, %s240_s22, %s241_s23  }
  0x23   :  { %233 = dma.done.wait [#allocation6], 384  }
  0x24   :  { %234 = vsyncadd [#allocation6], 4294966912 }
  0x25   :  { %235 = dma.done.wait [#allocation9], 384  }
  0x26   :  { %236 = vsyncadd [#allocation9], 4294966912  ;;  %v71_v0 = vlaneseq  ;;  %v243_v1 = vmov 0.0   ;;  %v82_v3 = vld [vmem:[#allocation5] sm:$0xff]  ;;  %v83_v4 = vld [vmem:[#allocation5 + $0x8] sm:$0xff]  ;;  %v98_v10 = vstv %s304_s0  ;;  %vm124_vm4 = vcmask 1043456  }
  0x27   :  { %68 = vst [vmem:[#allocation2 + $0x10] sm:$0xf] %v243_v1  ;;  %v84_v5 = vld [vmem:[#allocation5 + $0x10] sm:$0xf]  ;;  %v85_v7 = vld [vmem:[#allocation8] sm:$0xff]  ;;  %v86_v8 = vld [vmem:[#allocation8 + $0x8] sm:$0xff] }
  0x28   :  { %v72_v2 = vshrl.u32 %v71_v0, 7  ;;  %v87_v9 = vld [vmem:[#allocation8 + $0x10] sm:$0xf]  ;;  %v88_v11 = vsub.f32 %v82_v3, %v85_v7  ;;  %v89_v12 = vsub.f32 %v83_v4, %v86_v8  ;;  %vm94_vm0 = vcmp.ne.f32.partialorder %v85_v7, 0.0  ;;  %s244_s0 = smov [#allocation10]  }
  0x29   :  { %v90_v13 = vsub.f32 %v84_v5, %v87_v9  ;;  %vm95_vm1 = vcmp.ne.f32.partialorder %v86_v8, 0.0  ;;  %vm96_vm2 = vcmp.ne.f32.partialorder %v87_v9, 0.0  ;;  %v99_v14 = vsel %vm94_vm0, 1.0, %v98_v10  ;;  %s145_s2 = sshll.u32 %s244_s0, 4  ;;  %s146_s2 = int_to_ptr.vmem [resolvable:$true] %s145_s2 }
  0x2a   :  { %v74_v6 = vadd.s32 16, %v72_v2  ;;  %v91_v15 = vmul.f32 %v88_v11, %v88_v11  ;;  %v92_v16 = vmul.f32 %v89_v12, %v89_v12  ;;  %v100_v18 = vsel %vm95_vm1, 1.0, %v98_v10  ;;  %s211_s14 = scalar_lea.vmem %s146_s2, 128  ;;  %p216_p3 = scmp.lt.s32.totalorder %s146_s2, %s146_s2 }
  0x2b   :  { %v93_v17 = vmul.f32 %v90_v13, %v90_v13  ;;  %v101_v19 = vsel %vm96_vm2, 1.0, %v98_v10  ;;  %p212_p2 = scmp.ne.s32.totalorder %s146_s2, %s211_s14  ;;  %p217_p4 = scmp.lt.s32.totalorder %s211_s14, %s211_s14 }
  0x2c   :  { %vm81_vm3 = vcmp.lt.s32.totalorder %v74_v6, 20  ;;  %v105_v21 = vmul.f32 %v99_v14, %v91_v15  ;;  %v106_v22 = vmul.f32 %v100_v18, %v92_v16 }
  0x2d   :  { %v107_v23 = vmul.f32 %v101_v19, %v93_v17  ;;  %p218_p5 = por %p217_p4, %p216_p3 }
  0x2e   :  { %v104_v20 = vld [vmem:[#allocation2 + $0x10] sm:$0xf]  ;;  %v123_v26 = vadd.f32 %v106_v22, %v105_v21 }
  0x2f   :  { %v110_v24 = vsel %vm81_vm3, %v107_v23, 0.0  ;;  %p219_p6 = pnand %p218_p5, %p212_p2 }
  0x30   :  { %v113_v25 = vadd.f32 %v110_v24, %v104_v20 }
  0x32   :  { %116 = vst [vmem:[#allocation2 + $0x10] sm:$0xf] %v113_v25 }
  0x39   :  { %v122_v27 = vld [vmem:[#allocation2 + $0x10] sm:$0xf] }
  0x3a   :  { %v125_v28 = vsel %vm124_vm4, %v122_v27, 0.0 }
  0x3b   :  { %v126_v29 = vadd.f32 %v125_v28, %v123_v26 }
  0x3d   :  { %127 = vadd.xlane.f32.xlu0 %v126_v29 }
  0xca   :  { %v128_v30 = vpop.xlane.xlu0 %127 }
  0xcb   :  { %v129_v31 = vrot.slane %v128_v30, 4 }
  0xcd   :  { %v130_v32 = vadd.f32 %v129_v31, %v128_v30 }
  0xcf   :  { %v131_v33 = vrot.slane %v130_v32, 2 }
  0xd1   :  { %v132_v34 = vadd.f32 %v131_v33, %v130_v32 }
  0xd3   :  { %v133_v35 = vrot.slane %v132_v34, 1 }
  0xd5   :  { %v134_v36 = vadd.f32 %v133_v35, %v132_v34 }
  0xd7   :  { %159 = vpush %v134_v36 }
 0x108   :  { %s160_s12 = spop %159 }
 0x109   :  { %s136_s13 = smul.f32 0.000390625, %s160_s12 }
 0x10b   :  { %v137_v37 = vstv %s136_s13 }
 0x10c   :  { %138 = vst [vmem:[#allocation10] sm:$0xff] %v137_v37 }
 0x10d   :  { %222 = shalt.err (!%p219_p6)
}
 0x10e   :  { %s223_s17 = scalar_lea.hbm %s307_s3, 128 }
 0x10f   :  { %p224_p7 = scmp.ne.s32.totalorder %s307_s3, %s223_s17  ;;  %p227_p8 = scmp.lt.u32.totalorder %s223_s17, %s307_s3 }
 0x111   :  { %p229_p9 = pnand %p227_p8, %p224_p7 }
 0x113   :  { %232 = shalt.err (!%p229_p9)
}
 0x114   :  { %148 = dma.vmem_to_hbm [thread:$0]  %s146_s2, 128, %s307_s3, [#allocation7]  }
 0x115   :  { %237 = dma.done.wait [#allocation7], 128  }
 0x116   :  { %238 = vsyncadd [#allocation7], 4294967168 }
 0x117   :  { %152 = vsyncpa [#allocation6], 1 }
 0x118   :  { %153 = vsyncpa [#allocation9], 1 }
 0x119   :  { %154 = vsyncpa [#allocation7], 1 }

</bundles_post_ra>
